<compile_context>
chip_gen: v7x
topology: tpu7x:2x2x1
jax: 0.10.0
libtpu: 0.0.40
codegen_flags: <defaults>
</compile_context>

<pallas_src>
import jax
import jax.numpy as jnp
import numpy as np
from jax.experimental import pallas as pl
from jax.experimental.pallas import tpu as pltpu

_LANE = 128
_SUBLANE = 8
_MIN_TILE = _LANE * _SUBLANE          # 1024-element padding granularity
_MAX_BLOCK_ROWS = 8192                # 4 MiB f32 block -> bounded for v7x VMEM
_VMEM_LIMIT = 32 * 1024 * 1024        # explicit scoped-VMEM limit (safe on v5e/v6e/v7x)


# ---------------------------------------------------------------------------
# Elementwise BCE (PyTorch nn.BCELoss semantics: log clamped at -100 BEFORE mul)
# ---------------------------------------------------------------------------
def _bce_elementwise(p, y, binary_targets: bool = False):
    p = p.astype(jnp.float32)
    y = y.astype(jnp.float32)
    if binary_targets:
        # Single EUP log per element; exact only when y is strictly {0, 1}.
        chosen = jnp.where(y > 0.5, p, 1.0 - p)
        return -jnp.maximum(jnp.log(chosen), -100.0)
    log_p = jnp.maximum(jnp.log(p), -100.0)
    log_1mp = jnp.maximum(jnp.log(1.0 - p), -100.0)
    return -(y * log_p + (1.0 - y) * log_1mp)


# ---------------------------------------------------------------------------
# Kernels
# ---------------------------------------------------------------------------
def _make_loc_sum_kernel(block_rows, rows_total, needs_mask, binary_targets):
    """Warm-up phase: per-block (8,128) partial BCE sums (no cross-lane reduce,
    no carried state -> grid is fully parallel / megacore-shardable)."""
    def kernel(pm_ref, am_ref, psum_ref):
        bce = _bce_elementwise(pm_ref[...], am_ref[...], binary_targets)
        if needs_mask:
            # Partial last block: rows beyond the array contain garbage reads.
            i = pl.program_id(0)
            row_ids = (jax.lax.broadcasted_iota(jnp.int32, bce.shape, 0)
                       + i * block_rows)
            bce = jnp.where(row_ids < rows_total, bce, 0.0)
        # (block_rows,128) -> (block_rows/8, 8, 128): free vreg-group split,
        # reduced with VPU adds only; the scalar reduce happens outside.
        psum_ref[0] = jnp.sum(
            bce.reshape(block_rows // _SUBLANE, _SUBLANE, _LANE), axis=0)
    return kernel


def _make_loc_elem_kernel(binary_targets):
    """Bootstrapped phase: per-pixel BCE map only (feeds top-k outside)."""
    def kernel(pm_ref, am_ref, loc_ref):
        loc_ref[...] = _bce_elementwise(pm_ref[...], am_ref[...], binary_targets)
    return kernel


# ---------------------------------------------------------------------------
# Packing helpers
# ---------------------------------------------------------------------------
def _flatten_float(x):
    x = jnp.asarray(x).reshape(-1)
    if not jnp.issubdtype(x.dtype, jnp.floating):
        x = x.astype(jnp.float32)
    return x


def _pack_lane_dense(x_flat):
    """View the flat vector as (rows, 128).  Padding (value 1.0, BCE(1,1)==0)
    only happens when the size is not already a multiple of 1024 elements, so
    the full-tensor pad copy is avoided for typical H*W map sizes."""
    n = x_flat.shape[0]
    n_pad = (-n) % _MIN_TILE
    if n_pad:
        # NOTE: correctness relies on padding BOTH predicted and target with
        # 1.0 and on the -100 clamp happening before the multiply.
        x_flat = jnp.pad(x_flat, (0, n_pad), constant_values=1.0)
    return x_flat.reshape(-1, _LANE)


def _choose_block_rows(rows, max_block_rows):
    cap = min(max(8, int(max_block_rows)), _MAX_BLOCK_ROWS)
    cap = (cap // _SUBLANE) * _SUBLANE
    return max(_SUBLANE, min(cap, rows))   # rows is a multiple of 8


# ---------------------------------------------------------------------------
# pallas_call wrappers
# ---------------------------------------------------------------------------
def _loc_bce_sum(pm2, am2, block_rows, binary_targets):
    rows = pm2.shape[0]
    grid = pl.cdiv(rows, block_rows)
    needs_mask = (rows % block_rows) != 0
    kernel = _make_loc_sum_kernel(block_rows, rows, needs_mask, binary_targets)
    partials = pl.pallas_call(
        kernel,
        out_shape=jax.ShapeDtypeStruct((grid, _SUBLANE, _LANE), jnp.float32),
        grid=(grid,),
        in_specs=[
            pl.BlockSpec((block_rows, _LANE), lambda i: (i, 0)),
            pl.BlockSpec((block_rows, _LANE), lambda i: (i, 0)),
        ],
        out_specs=pl.BlockSpec((1, _SUBLANE, _LANE), lambda i: (i, 0, 0)),
        compiler_params=pltpu.CompilerParams(
            dimension_semantics=("parallel",),
            vmem_limit_bytes=_VMEM_LIMIT),
    )(pm2, am2)
    return jnp.sum(partials)


def _loc_bce_elem(pm2, am2, block_rows, binary_targets):
    rows = pm2.shape[0]
    grid = pl.cdiv(rows, block_rows)
    kernel = _make_loc_elem_kernel(binary_targets)
    return pl.pallas_call(
        kernel,
        out_shape=jax.ShapeDtypeStruct((rows, _LANE), jnp.float32),
        grid=(grid,),
        in_specs=[
            pl.BlockSpec((block_rows, _LANE), lambda i: (i, 0)),
            pl.BlockSpec((block_rows, _LANE), lambda i: (i, 0)),
        ],
        out_specs=pl.BlockSpec((block_rows, _LANE), lambda i: (i, 0)),
        compiler_params=pltpu.CompilerParams(
            dimension_semantics=("parallel",),
            vmem_limit_bytes=_VMEM_LIMIT),
    )(pm2, am2)


# ---------------------------------------------------------------------------
# Public wrapper (matches LocalizationDetectionBootstrappedBCE.forward, BCE_LOSS)
# ---------------------------------------------------------------------------
def localization_detection_bootstrapped_bce(
        predicted_map, predicted_class, actual_map, actual_class, it: int = 0,
        start_warm: int = 20000, end_warm: int = 70000, top_p: float = 0.15,
        detection_loss_weight: float = 0.5, localization_loss_weight: float = 0.5,
        block_rows: int = 2048, binary_targets: bool = False):
    """JAX/Pallas equivalent of LocalizationDetectionBootstrappedBCE.forward
    with LossType.BCE_LOSS (inputs are probabilities)."""
    pm = _flatten_float(predicted_map)
    am = _flatten_float(actual_map)
    pc = _flatten_float(predicted_class)
    ac = _flatten_float(actual_class)

    n_map = pm.shape[0]

    # ---- detection loss: tiny class tensor -> plain jnp (fuses into XLA,
    #      avoids a dedicated pallas_call launch) ----
    det_loss = jnp.mean(_bce_elementwise(pc, ac, binary_targets)) \
        * detection_loss_weight

    # ---- localization loss: gridded over lane-dense row blocks ----
    pm2 = _pack_lane_dense(pm)
    am2 = _pack_lane_dense(am)
    rows = pm2.shape[0]
    br = _choose_block_rows(rows, block_rows)

    this_p = 1.0
    if it >= start_warm:
        if it > end_warm:
            this_p = top_p
        else:
            this_p = top_p + (1.0 - top_p) * ((end_warm - it) / (end_warm - start_warm))

    if it >= start_warm and this_p < 1.0:
        k = int(n_map * this_p)          # matches torch: int() truncation
        loc_elem = _loc_bce_elem(pm2, am2, br, binary_targets)
        # TODO(synk): jax.lax.top_k is a full-device selection; an exact
        # in-kernel radix/histogram threshold reduction would avoid the
        # per-pixel writeback + re-read (and the per-`it` recompile from the
        # static k) but needs multi-pass bit-level selection to stay exact.
        loc_vals, _ = jax.lax.top_k(loc_elem.reshape(-1)[:n_map], k)
        loc_loss = jnp.mean(loc_vals) * localization_loss_weight
    else:
        # this_p == 1.0 -> top-k over all pixels is just the mean: use the
        # bandwidth-optimal partial-sum kernel (no per-pixel writeback).
        loc_sum = _loc_bce_sum(pm2, am2, br, binary_targets)
        loc_loss = (loc_sum / n_map) * localization_loss_weight

    return loc_loss + det_loss, this_p


# ---------------------------------------------------------------------------
# Pure-JAX reference for verification
# ---------------------------------------------------------------------------
def _ref_loss(predicted_map, predicted_class, actual_map, actual_class, it,
              start_warm=20000, end_warm=70000, top_p=0.15,
              detection_loss_weight=0.5, localization_loss_weight=0.5):
    def bce(p, y):
        p = p.astype(jnp.float32)
        y = y.astype(jnp.float32)
        return -(y * jnp.maximum(jnp.log(p), -100.0)
                 + (1.0 - y) * jnp.maximum(jnp.log(1.0 - p), -100.0))

    det = jnp.mean(bce(predicted_class, actual_class)) * detection_loss_weight
    loc_raw = bce(predicted_map, actual_map).reshape(-1)
    this_p = 1.0
    if it >= start_warm:
        if it > end_warm:
            this_p = top_p
        else:
            this_p = top_p + (1.0 - top_p) * ((end_warm - it) / (end_warm - start_warm))
        k = int(loc_raw.shape[0] * this_p)
        loc_raw, _ = jax.lax.top_k(loc_raw, k)
    loc = jnp.mean(loc_raw) * localization_loss_weight
    return loc + det, this_p


if __name__ == "__main__":
    key = jax.random.PRNGKey(0)

    # (shape, block_rows override, iterations to test)
    cases = [
        ((2, 1, 32, 32), 2048, (0, 20_000, 25_000, 80_000)),  # default path
        ((2, 1, 48, 32), 16,   (0, 25_000)),                  # partial last block (mask path)
        ((2, 1, 31, 31), 2048, (0, 25_000)),                  # pad-to-1024 path
    ]

    for shape, br, its in cases:
        k1, k2, k3, k4, key = jax.random.split(key, 5)
        B = shape[0]
        # BCE_LOSS expects probabilities in [0, 1].
        predicted_map = jax.nn.sigmoid(jax.random.normal(k1, shape, jnp.float32))
        actual_map = jax.random.bernoulli(k2, 0.5, shape).astype(jnp.float32)
        predicted_class = jax.nn.sigmoid(jax.random.normal(k3, (B, 1), jnp.float32))
        actual_class = jax.random.bernoulli(k4, 0.5, (B, 1)).astype(jnp.float32)

        for it in its:
            if shape == (2, 1, 32, 32) and it in (0, 25_000):
                binary_variants = (False, True)   # single-log variant (binary targets)
            else:
                binary_variants = (False,)
            for binary_targets in binary_variants:
                loss, this_p = localization_detection_bootstrapped_bce(
                    predicted_map, predicted_class, actual_map, actual_class,
                    it=it, block_rows=br, binary_targets=binary_targets)
                loss = jax.block_until_ready(loss)
                ref_loss, ref_p = _ref_loss(predicted_map, predicted_class,
                                            actual_map, actual_class, it)
                np.testing.assert_allclose(np.asarray(loss), np.asarray(ref_loss),
                                           rtol=1e-3, atol=1e-5)
                assert abs(this_p - ref_p) < 1e-12
                assert bool(jnp.isfinite(loss))

    print("KERNEL_OK")
</pallas_src>

<mosaic_0001>
module attributes {stable_mosaic.version = 11 : i64} {
  func.func @kernel(%arg0: i32, %arg1: memref<16x128xf32, #tpu.memory_space<vmem>>, %arg2: memref<16x128xf32, #tpu.memory_space<vmem>>, %arg3: memref<1x8x128xf32, #tpu.memory_space<vmem>>) attributes {dimension_semantics = [#tpu.dimension_semantics<parallel>], iteration_bounds = array<i64: 1>, scalar_prefetch = 0 : i64, scratch_operands = 0 : i64, tpu.core_type = #tpu.core_type<tc>, window_params = [{transform_indices = @transform_0, window_bounds = array<i64: 16, 128>}, {transform_indices = @transform_1, window_bounds = array<i64: 16, 128>}, {transform_indices = @transform_2, window_bounds = array<i64: 1, 8, 128>}]} {
    %c0 = arith.constant 0 : index
    %c0_0 = arith.constant 0 : index
    %0 = vector.load %arg1[%c0, %c0_0] : memref<16x128xf32, #tpu.memory_space<vmem>>, vector<16x128xf32>
    %c0_1 = arith.constant 0 : index
    %c0_2 = arith.constant 0 : index
    %1 = vector.load %arg2[%c0_1, %c0_2] : memref<16x128xf32, #tpu.memory_space<vmem>>, vector<16x128xf32>
    %2 = math.log %0 : vector<16x128xf32>
    %cst = arith.constant -1.000000e+02 : f32
    %3 = vector.broadcast %cst : f32 to vector<16x128xf32>
    %4 = arith.maximumf %2, %3 : vector<16x128xf32>
    %cst_3 = arith.constant 1.000000e+00 : f32
    %5 = vector.broadcast %cst_3 : f32 to vector<16x128xf32>
    %6 = arith.subf %5, %0 : vector<16x128xf32>
    %7 = math.log %6 : vector<16x128xf32>
    %cst_4 = arith.constant -1.000000e+02 : f32
    %8 = vector.broadcast %cst_4 : f32 to vector<16x128xf32>
    %9 = arith.maximumf %7, %8 : vector<16x128xf32>
    %10 = arith.mulf %1, %4 : vector<16x128xf32>
    %cst_5 = arith.constant 1.000000e+00 : f32
    %11 = vector.broadcast %cst_5 : f32 to vector<16x128xf32>
    %12 = arith.subf %11, %1 : vector<16x128xf32>
    %13 = arith.mulf %12, %9 : vector<16x128xf32>
    %14 = arith.addf %10, %13 : vector<16x128xf32>
    %cst_6 = arith.constant 0.000000e+00 : f32
    %15 = vector.broadcast %cst_6 : f32 to vector<16x128xf32>
    %16 = arith.subf %15, %14 : vector<16x128xf32>
    %17 = vector.shape_cast %16 : vector<16x128xf32> to vector<2x8x128xf32>
    %cst_7 = arith.constant dense<0.000000e+00> : vector<8x128xf32>
    %18 = vector.multi_reduction <add>, %17, %cst_7 [0] : vector<2x8x128xf32> to vector<8x128xf32>
    %c0_8 = arith.constant 0 : index
    %c0_9 = arith.constant 0 : index
    %c0_10 = arith.constant 0 : index
    %19 = vector.load %arg3[%c0_8, %c0_9, %c0_10] : memref<1x8x128xf32, #tpu.memory_space<vmem>>, vector<1x8x128xf32>
    %20 = vector.shape_cast %19 : vector<1x8x128xf32> to vector<8x128xf32>
    %21 = vector.shape_cast %18 : vector<8x128xf32> to vector<1x8x128xf32>
    tpu.vector_store %arg3[%c0_8, %c0_9, %c0_10], %21 {strides = array<i32>} : memref<1x8x128xf32, #tpu.memory_space<vmem>>, vector<1x8x128xf32>,
    return
  }
  func.func @transform_0(%arg0: i32) -> (i32, i32) {
    %c0_i32 = arith.constant 0 : i32
    %c0_i32_0 = arith.constant 0 : i32
    return %arg0, %c0_i32 : i32, i32
  }
  func.func @transform_1(%arg0: i32) -> (i32, i32) {
    %c0_i32 = arith.constant 0 : i32
    %c0_i32_0 = arith.constant 0 : i32
    return %arg0, %c0_i32 : i32, i32
  }
  func.func @transform_2(%arg0: i32) -> (i32, i32, i32) {
    %c0_i32 = arith.constant 0 : i32
    %c0_i32_0 = arith.constant 0 : i32
    %c0_i32_1 = arith.constant 0 : i32
    return %arg0, %c0_i32, %c0_i32_0 : i32, i32, i32
  }
}

</mosaic_0001>

<bundles_post_ra>
// kernel: tpu_custom_call.1
= control target key start
LH: loop header
LB: loop body
LE: loop exit
PB: predicated region body
PF: predicated region fallthrough
CT: control target
= control target key end

     0   :  { %7 = vsyncpa [#allocation3], 0  ;;  %s227_s0 = inlined_call_operand.hbm [shape: f32[16,128], index: 0, kind: input, shape index: {}]   ;;  %s228_s1 = inlined_call_operand.hbm [shape: f32[16,128], index: 1, kind: input, shape index: {}]   ;;  %s229_s2 = inlined_call_operand.hbm [shape: f32[1,8,128], index: 2, kind: output, shape index: {}]  }
   0x1   :  { %8 = vsyncpa [#allocation6], 0 }
   0x2   :  { %9 = vsyncpa [#allocation4], 0  ;;  %s171_s9 = smov [#allocation2]   ;;  %s99_s13 = scalar_lea.hbm %s227_s0, 256 }
   0x3   :  { %s15_s10 = sshll.u32 %s171_s9, 4  ;;  %p100_p0 = scmp.ne.s32.totalorder %s227_s0, %s99_s13  ;;  %s16_s10 = int_to_ptr.vmem [resolvable:$true] %s15_s10 }
   0x4   :  { %p103_p1 = scmp.lt.u32.totalorder %s99_s13, %s227_s0 }
   0x6   :  { %p105_p2 = pnand %p103_p1, %p100_p0 }
   0x8   :  { %108 = shalt.err (!%p105_p2)
}
   0x9   :  { %s109_s18 = scalar_lea.vmem %s16_s10, 256  ;;  %p114_p4 = scmp.lt.s32.totalorder %s16_s10, %s16_s10 }
   0xa   :  { %p110_p3 = scmp.ne.s32.totalorder %s16_s10, %s109_s18  ;;  %p115_p5 = scmp.lt.s32.totalorder %s109_s18, %s109_s18 }
   0xc   :  { %p116_p6 = por %p115_p5, %p114_p4 }
   0xe   :  { %p117_p7 = pnand %p116_p6, %p110_p3 }
  0x10   :  { %120 = shalt.err (!%p117_p7)
}
  0x11   :  { %s172_s19 = smov 128   ;;  %s173_s20 = smov 8  }
  0x12   :  { %21 = dma.hbm_to_vmem [thread:$0]  %s227_s0, 256, %s16_s10, [#allocation3], %s172_s19, %s172_s19, %s173_s20  }
  0x13   :  { %s174_s23 = smov [#allocation5]   ;;  %s121_s27 = scalar_lea.hbm %s228_s1, 256 }
  0x14   :  { %s27_s24 = sshll.u32 %s174_s23, 4  ;;  %p122_p8 = scmp.ne.s32.totalorder %s228_s1, %s121_s27  ;;  %s28_s24 = int_to_ptr.vmem [resolvable:$true] %s27_s24 }
  0x15   :  { %p125_p9 = scmp.lt.u32.totalorder %s121_s27, %s228_s1 }
  0x17   :  { %p127_p10 = pnand %p125_p9, %p122_p8 }
  0x19   :  { %130 = shalt.err (!%p127_p10)
}
  0x1a   :  { %s131_s4 = scalar_lea.vmem %s28_s24, 256  ;;  %p136_p12 = scmp.lt.s32.totalorder %s28_s24, %s28_s24 }
  0x1b   :  { %p132_p11 = scmp.ne.s32.totalorder %s28_s24, %s131_s4  ;;  %p137_p13 = scmp.lt.s32.totalorder %s131_s4, %s131_s4 }
  0x1d   :  { %p138_p0 = por %p137_p13, %p136_p12 }
  0x1f   :  { %p139_p1 = pnand %p138_p0, %p132_p11 }
  0x21   :  { %142 = shalt.err (!%p139_p1)
}
  0x22   :  { %33 = dma.hbm_to_vmem [thread:$0]  %s228_s1, 256, %s28_s24, [#allocation6], %s172_s19, %s172_s19, %s173_s20  }
  0x23   :  { %165 = dma.done.wait [#allocation3], 256  }
  0x24   :  { %166 = vsyncadd [#allocation3], 4294967040 }
  0x25   :  { %167 = dma.done.wait [#allocation6], 256  }
  0x26   :  { %168 = vsyncadd [#allocation6], 4294967040  ;;  %v40_v0 = vld [vmem:[#allocation2] sm:$0xff]  ;;  %v41_v1 = vld [vmem:[#allocation2 + $0x8] sm:$0xff]  ;;  %s175_s1 = smov [#allocation7]  }
  0x27   :  { %91 = vlog2.f32 %v40_v0  ;;  %v50_v2 = vsub.f32 1.0, %v40_v0  ;;  %v51_v3 = vsub.f32 1.0, %v41_v1  ;;  %v42_v5 = vld [vmem:[#allocation5] sm:$0xff]  ;;  %v43_v7 = vld [vmem:[#allocation5 + $0x8] sm:$0xff]  ;;  %s76_s6 = sshll.u32 %s175_s1, 4  ;;  %s77_s6 = int_to_ptr.vmem [resolvable:$true] %s76_s6 }
  0x28   :  { %93 = vlog2.f32 %v41_v1  ;;  %v60_v14 = vsub.f32 1.0, %v42_v5  ;;  %v61_v17 = vsub.f32 1.0, %v43_v7  ;;  %s143_s7 = scalar_lea.vmem %s77_s6, 128  ;;  %p148_p3 = scmp.lt.s32.totalorder %s77_s6, %s77_s6 }
  0x29   :  { %95 = vlog2.f32 %v50_v2  ;;  %p144_p2 = scmp.ne.s32.totalorder %s77_s6, %s143_s7  ;;  %p149_p4 = scmp.lt.s32.totalorder %s143_s7, %s143_s7 }
  0x2a   :  { %97 = vlog2.f32 %v51_v3 }
  0x2b   :  { %p150_p5 = por %p149_p4, %p148_p3 }
  0x2d   :  { %p151_p6 = pnand %p150_p5, %p144_p2 }
  0x31   :  { %v92_v4 = vpop.eup %91 }
  0x32   :  { %v94_v6 = vpop.eup %93  ;;  %v45_v8 = vmul.f32 0.6931472, %v92_v4 }
  0x33   :  { %v96_v9 = vpop.eup %95  ;;  %v47_v10 = vmul.f32 0.6931472, %v94_v6 }
  0x34   :  { %v98_v11 = vpop.eup %97  ;;  %v48_v12 = vmax.f32 %v45_v8, -100.0  ;;  %v53_v13 = vmul.f32 0.6931472, %v96_v9 }
  0x35   :  { %v49_v15 = vmax.f32 %v47_v10, -100.0  ;;  %v55_v16 = vmul.f32 0.6931472, %v98_v11 }
  0x36   :  { %v56_v18 = vmax.f32 %v53_v13, -100.0  ;;  %v58_v19 = vmul.f32 %v48_v12, %v42_v5 }
  0x37   :  { %v57_v20 = vmax.f32 %v55_v16, -100.0  ;;  %v59_v21 = vmul.f32 %v49_v15, %v43_v7 }
  0x38   :  { %v62_v22 = vmul.f32 %v60_v14, %v56_v18 }
  0x39   :  { %v63_v23 = vmul.f32 %v61_v17, %v57_v20 }
  0x3a   :  { %v64_v24 = vadd.f32 %v62_v22, %v58_v19 }
  0x3b   :  { %v65_v25 = vadd.f32 %v63_v23, %v59_v21 }
  0x3c   :  { %v66_v26 = vsub.f32 0.0, %v64_v24 }
  0x3d   :  { %v67_v27 = vsub.f32 0.0, %v65_v25 }
  0x3f   :  { %v68_v28 = vadd.f32 %v67_v27, %v66_v26 }
  0x41   :  { %69 = vst [vmem:[#allocation7] sm:$0xff] %v68_v28 }
  0x42   :  { %154 = shalt.err (!%p151_p6)
}
  0x43   :  { %s155_s10 = scalar_lea.hbm %s229_s2, 128 }
  0x44   :  { %p156_p7 = scmp.ne.s32.totalorder %s229_s2, %s155_s10  ;;  %p159_p8 = scmp.lt.u32.totalorder %s155_s10, %s229_s2 }
  0x46   :  { %p161_p9 = pnand %p159_p8, %p156_p7 }
  0x48   :  { %164 = shalt.err (!%p161_p9)
}
  0x49   :  { %79 = dma.vmem_to_hbm [thread:$0]  %s77_s6, 128, %s229_s2, [#allocation4]  }
  0x4a   :  { %169 = dma.done.wait [#allocation4], 128  }
  0x4b   :  { %170 = vsyncadd [#allocation4], 4294967168 }
  0x4c   :  { %83 = vsyncpa [#allocation3], 1 }
  0x4d   :  { %84 = vsyncpa [#allocation6], 1 }
  0x4e   :  { %85 = vsyncpa [#allocation4], 1 }

</bundles_post_ra>
